<compile_context>
chip_gen: v5e
topology: v5e:2x2
jax: 0.10.0
libtpu: 0.0.40
codegen_flags: <defaults>
</compile_context>

<pallas_src>
import jax
import jax.numpy as jnp
from jax.experimental import pallas as pl
from jax.experimental.pallas import tpu as pltpu


def _round_up(x, m):
    return ((x + m - 1) // m) * m


def attn_combiner_kernel(x_ref, w1_ref, w2_ref, o_ref):
    # (tile, D) @ (D, A) on the MXU with f32 accumulation; tanh in f32 (EUP).
    h_bar = jnp.tanh(
        jnp.dot(x_ref[...], w1_ref[...], preferred_element_type=jnp.float32)
    )
    # Width-1 second projection: VPU multiply + lane reduce (keeps the MXU free,
    # w2 arrives lane-dense as a (1, A) f32 row).
    s = jnp.sum(h_bar * w2_ref[...], axis=-1)            # (tile,)
    # Lane-dense store: one (1, 1, tile) row per grid step (no masked vst).
    o_ref[...] = s.reshape(o_ref.shape).astype(o_ref.dtype)


def attn_combiner(hiddens, w1, w2, *, tile_rows=512, compute_dtype=jnp.float32):
    """AttnCombiner forward.

    hiddens: (B, T, D) with D = hidden_size * num_directions
    w1:      (A, D)   ws1.weight
    w2:      (1, A)   ws2.weight
    returns  (B, T)   attention logits
    """
    B, T, D = hiddens.shape
    A = w1.shape[0]
    N = B * T

    # Row tiling: large tiles amortize per-step overhead and fill the MXU M dim.
    tile = min(tile_rows, _round_up(N, 8))
    if tile < N:
        tile = _round_up(tile, 128)       # lane-dense output blocks need %128
    n_pad = _round_up(N, tile)
    n_tiles = n_pad // tile

    x_flat = hiddens.reshape(N, D).astype(compute_dtype)
    if n_pad != N:
        x_flat = jnp.pad(x_flat, ((0, n_pad - N), (0, 0)))
    w1_t = w1.T.astype(compute_dtype)         # (D, A), resident in VMEM
    w2_row = w2.astype(jnp.float32)           # (1, A), lane-dense, f32 reduce

    out = pl.pallas_call(
        attn_combiner_kernel,
        out_shape=jax.ShapeDtypeStruct((n_tiles, 1, tile), jnp.float32),
        grid_spec=pltpu.PrefetchScalarGridSpec(
            num_scalar_prefetch=0,
            grid=(n_tiles,),
            in_specs=[
                pl.BlockSpec((tile, D), lambda i: (i, 0)),   # x rows (streamed)
                pl.BlockSpec((D, A), lambda i: (0, 0)),      # w1 (fetched once)
                pl.BlockSpec((1, A), lambda i: (0, 0)),      # w2 row (fetched once)
            ],
            out_specs=pl.BlockSpec((1, 1, tile), lambda i: (i, 0, 0)),
        ),
        compiler_params=pltpu.CompilerParams(
            dimension_semantics=("parallel",),   # shards across v7x's 2 TCs
        ),
    )(x_flat, w1_t, w2_row)

    return out.reshape(n_pad)[:N].reshape(B, T)


def _orthogonal(key, shape, dtype=jnp.float32):
    """Deterministic orthogonal init matching torch.nn.init.orthogonal_ semantics."""
    rows, cols = shape
    n_max, n_min = max(rows, cols), min(rows, cols)
    a = jax.random.normal(key, (n_max, n_min), dtype=jnp.float32)
    q, r = jnp.linalg.qr(a)
    q = q * jnp.sign(jnp.diag(r))[None, :]   # sign fix -> unique decomposition
    if rows < cols:
        q = q.T
    return q.astype(dtype)


def _reference(hiddens, w1, w2):
    B, T, D = hiddens.shape
    return (jnp.tanh(hiddens.reshape(-1, D) @ w1.T) @ w2.T).reshape(B, T)


if __name__ == "__main__":
    # Shapes implied by the module: bidirectional LSTM hiddens.
    bidirectional = True
    hidden_size = 32
    attention_size = 128
    num_directions = 2 if bidirectional else 1
    D = hidden_size * num_directions  # 64
    A = attention_size                # 128

    key = jax.random.PRNGKey(0)
    k_h, k_w1, k_w2, k_h2 = jax.random.split(key, 4)

    w1 = _orthogonal(k_w1, (A, D))   # ws1.weight: (A, D)
    w2 = _orthogonal(k_w2, (1, A))   # ws2.weight: (1, A)

    # --- Small case (single grid step), f32, strict tolerance. ---
    B, T = 2, 8
    hiddens = jax.random.normal(k_h, (B, T, D), dtype=jnp.float32)
    alphas = attn_combiner(hiddens, w1, w2)
    jax.block_until_ready(alphas)
    ref = _reference(hiddens, w1, w2)
    assert alphas.shape == (B, T)
    assert jnp.allclose(alphas, ref, atol=1e-5, rtol=1e-5)

    # --- Larger case exercising the tiled path (4 row tiles of 512) + bf16 inputs. ---
    B2, T2 = 8, 256                  # N = 2048
    hiddens2 = jax.random.normal(k_h2, (B2, T2, D), dtype=jnp.float32)
    alphas2 = attn_combiner(hiddens2, w1, w2, tile_rows=512,
                            compute_dtype=jnp.bfloat16)
    jax.block_until_ready(alphas2)
    ref2 = _reference(hiddens2, w1, w2)
    assert alphas2.shape == (B2, T2)
    assert jnp.allclose(alphas2, ref2, atol=3e-2, rtol=3e-2)

    print("KERNEL_OK")
</pallas_src>

<mosaic_0001>
module attributes {stable_mosaic.version = 11 : i64} {
  func.func @attn_combiner_kernel(%arg0: i32, %arg1: memref<16x64xf32, #tpu.memory_space<vmem>>, %arg2: memref<64x128xf32, #tpu.memory_space<vmem>>, %arg3: memref<1x128xf32, #tpu.memory_space<vmem>>, %arg4: memref<1x1x16xf32, #tpu.memory_space<vmem>>) attributes {dimension_semantics = [#tpu.dimension_semantics<parallel>], iteration_bounds = array<i64: 1>, scalar_prefetch = 0 : i64, scratch_operands = 0 : i64, tpu.core_type = #tpu.core_type<tc>, window_params = [{transform_indices = @transform_0, window_bounds = array<i64: 16, 64>}, {pipeline_mode = #tpu.pipeline_mode<synchronous>, transform_indices = @transform_1, window_bounds = array<i64: 64, 128>}, {pipeline_mode = #tpu.pipeline_mode<synchronous>, transform_indices = @transform_2, window_bounds = array<i64: 1, 128>}, {transform_indices = @transform_3, window_bounds = array<i64: 1, 1, 16>}]} {
    %c0 = arith.constant 0 : index
    %c0_0 = arith.constant 0 : index
    %0 = vector.load %arg1[%c0, %c0_0] : memref<16x64xf32, #tpu.memory_space<vmem>>, vector<16x64xf32>
    %c0_1 = arith.constant 0 : index
    %c0_2 = arith.constant 0 : index
    %1 = vector.load %arg2[%c0_1, %c0_2] : memref<64x128xf32, #tpu.memory_space<vmem>>, vector<64x128xf32>
    %cst = arith.constant dense<0.000000e+00> : vector<16x128xf32>
    %2 = tpu.matmul %0, %1, %cst {dimension_numbers = #tpu.dot_dimension_numbers<[1], [0], [0], [1], [0, 0, 1, 1], [], []>} : vector<16x64xf32>, vector<64x128xf32>, vector<16x128xf32> -> vector<16x128xf32>
    %3 = math.tanh %2 : vector<16x128xf32>
    %c0_3 = arith.constant 0 : index
    %c0_4 = arith.constant 0 : index
    %4 = vector.load %arg3[%c0_3, %c0_4] : memref<1x128xf32, #tpu.memory_space<vmem>>, vector<1x128xf32>
    %5 = vector.broadcast %4 : vector<1x128xf32> to vector<16x128xf32>
    %6 = arith.mulf %3, %5 : vector<16x128xf32>
    %cst_5 = arith.constant dense<0.000000e+00> : vector<16xf32>
    %7 = vector.multi_reduction <add>, %6, %cst_5 [1] : vector<16x128xf32> to vector<16xf32>
    %8 = vector.shape_cast %7 : vector<16xf32> to vector<1x1x16xf32>
    %c0_6 = arith.constant 0 : index
    %c0_7 = arith.constant 0 : index
    %c0_8 = arith.constant 0 : index
    %9 = vector.load %arg4[%c0_6, %c0_7, %c0_8] : memref<1x1x16xf32, #tpu.memory_space<vmem>>, vector<1x1x16xf32>
    tpu.vector_store %arg4[%c0_6, %c0_7, %c0_8], %8 {strides = array<i32>} : memref<1x1x16xf32, #tpu.memory_space<vmem>>, vector<1x1x16xf32>,
    return
  }
  func.func @transform_0(%arg0: i32) -> (i32, i32) {
    %c0_i32 = arith.constant 0 : i32
    %c0_i32_0 = arith.constant 0 : i32
    return %arg0, %c0_i32 : i32, i32
  }
  func.func @transform_1(%arg0: i32) -> (i32, i32) {
    %c0_i32 = arith.constant 0 : i32
    %c0_i32_0 = arith.constant 0 : i32
    %c0_i32_1 = arith.constant 0 : i32
    return %c0_i32, %c0_i32_0 : i32, i32
  }
  func.func @transform_2(%arg0: i32) -> (i32, i32) {
    %c0_i32 = arith.constant 0 : i32
    %c0_i32_0 = arith.constant 0 : i32
    %c0_i32_1 = arith.constant 0 : i32
    return %c0_i32, %c0_i32_0 : i32, i32
  }
  func.func @transform_3(%arg0: i32) -> (i32, i32, i32) {
    %c0_i32 = arith.constant 0 : i32
    %c0_i32_0 = arith.constant 0 : i32
    %c0_i32_1 = arith.constant 0 : i32
    return %arg0, %c0_i32, %c0_i32_0 : i32, i32, i32
  }
}

</mosaic_0001>

<bundles_post_ra>
// kernel: tpu_custom_call.1
= control target key start
LH: loop header
LB: loop body
LE: loop exit
PB: predicated region body
PF: predicated region fallthrough
CT: control target
= control target key end

     0   :  { %8 = vsyncpa [#allocation3], 0  ;;  %s264_s0 = inlined_call_operand.hbm [shape: f32[16,64], index: 0, kind: input, shape index: {}]   ;;  %s265_s1 = inlined_call_operand.hbm [shape: f32[64,128], index: 1, kind: input, shape index: {}]   ;;  %s266_s2 = inlined_call_operand.vmem [shape: f32[1,128], index: 2, kind: input, shape index: {}]   ;;  %s267_s3 = inlined_call_operand.hbm [shape: f32[1,1,16], index: 3, kind: output, shape index: {}]  }
   0x1   :  { %9 = vsyncpa [#allocation6], 0 }
   0x2   :  { %10 = vsyncpa [#allocation4], 0  ;;  %s15_s14 = sshll.u32 %s264_s0, 4  ;;  %s227_s15 = smov [#allocation2]   ;;  %s16_s14 = int_to_ptr.hbm [resolvable:$true] %s15_s14 }
   0x3   :  { %s17_s16 = sshll.u32 %s227_s15, 4  ;;  %s28_s19 = sshll.u32 %s265_s1, 4  ;;  %s18_s16 = int_to_ptr.vmem [resolvable:$true] %s17_s16  ;;  %s29_s19 = int_to_ptr.hbm [resolvable:$true] %s28_s19 }
   0x4   :  { %s228_s20 = smov 128   ;;  %s229_s21 = smov 8  }
   0x5   :  { %23 = dma.hbm_to_vmem [thread:$0]  %s16_s14, 256, %s18_s16, [#allocation3], %s228_s20, %s228_s20, %s229_s21  }
   0x6   :  { %s230_s22 = smov [#allocation5]  }
   0x7   :  { %s30_s23 = sshll.u32 %s230_s22, 4  ;;  %s31_s23 = int_to_ptr.vmem [resolvable:$true] %s30_s23 }
   0x8   :  { %36 = dma.hbm_to_vmem [thread:$0]  %s29_s19, 1024, %s31_s23, [#allocation6], %s228_s20, %s228_s20, %s229_s21  }
   0x9   :  { %221 = dma.done.wait [#allocation3], 256  }
   0xa   :  { %222 = vsyncadd [#allocation3], 4294967040 }
   0xb   :  { %223 = dma.done.wait [#allocation6], 1024  }
   0xc   :  { %224 = vsyncadd [#allocation6], 4294966272  ;;  %v56_v0 = vld [vmem:[#allocation5 + $0x38] sm:$0xff]  ;;  %v55_v1 = vld [vmem:[#allocation5 + $0x30] sm:$0xff]  ;;  %vm57_vm0 = vcmask 523264   ;;  %v101_v17 = vlaneseq  ;;  %s231_s24 = smov [#allocation7]  }
   0xd   :  { %72 = vmatpush.msra.mxu0 %v56_v0  ;;  %131 = vmatpush.msra.mxu1 %v56_v0  ;;  %v54_v2 = vld [vmem:[#allocation5 + $0x28] sm:$0xff]  ;;  %v53_v3 = vld [vmem:[#allocation5 + $0x20] sm:$0xff]  ;;  %v52_v4 = vld [vmem:[#allocation5 + $0x18] sm:$0xff]  ;;  %s116_s25 = sshll.u32 %s231_s24, 4  ;;  %s118_s28 = sshll.u32 %s267_s3, 4  ;;  %vm106_vm1 = vcmask 130112   ;;  %s117_s25 = int_to_ptr.vmem [resolvable:$true] %s116_s25  ;;  %s119_s28 = int_to_ptr.hbm [resolvable:$true] %s118_s28 }
   0xe   :  { %v51_v5 = vld [vmem:[#allocation5 + $0x10] sm:$0xff]  ;;  %v50_v6 = vld [vmem:[#allocation5 + $0x8] sm:$0xff]  ;;  %v49_v7 = vld [vmem:[#allocation5] sm:$0xff]  ;;  %v102_v19 = vand.u32 127, %v101_v17  ;;  %vm109_vm2 = vcmask 122880  }
   0xf   :  { %73 = vmatpush.msra.mxu0 %v55_v1  ;;  %132 = vmatpush.msra.mxu1 %v55_v1  ;;  %v47_v8 = vld [vmem:[#allocation2] sm:$0xff]  ;;  %v48_v9 = vld [vmem:[#allocation2 + $0x8] sm:$0xff] }
  0x10   :  { %v144_v12 = vld [vmem:[%s266_s2] ss:$0 sm:$0xff]  ;;  %v104_v20 = vadd.s32 4294967288, %v102_v19 }
  0x11   :  { %74 = vmatpush.msra.mxu0 %v54_v2  ;;  %133 = vmatpush.msra.mxu1 %v54_v2 }
  0x13   :  { %75 = vmatpush.msra.mxu0 %v53_v3  ;;  %134 = vmatpush.msra.mxu1 %v53_v3 }
  0x15   :  { %76 = vmatpush.msra.mxu0 %v52_v4  ;;  %135 = vmatpush.msra.mxu1 %v52_v4 }
  0x17   :  { %77 = vmatpush.msra.mxu0 %v51_v5  ;;  %136 = vmatpush.msra.mxu1 %v51_v5 }
  0x19   :  { %78 = vmatpush.msra.mxu0 %v50_v6  ;;  %137 = vmatpush.msra.mxu1 %v50_v6 }
  0x1b   :  { %79 = vmatpush.msra.mxu0 %v49_v7  ;;  %138 = vmatpush.msra.mxu1 %v49_v7 }
  0x1c   :  { %129 = vmatmul.msk.f32.vlgmr.msra.gmra.mxu0 %vm57_vm0, %v47_v8  ;;  %130 = vmatmul.msk.f32.vlgmr.msra.gmra.mxu1 %vm57_vm0, %v48_v9 }
  0x99   :  { %v81_v10 = vpop.f32.mrf.mxu0  ;;  %v84_v11 = vpop.f32.mrf.mxu1 }
  0x9a   :  { %145 = vtanh.f32 %v81_v10 }
  0x9b   :  { %147 = vtanh.f32 %v84_v11 }
  0xa0   :  { %v146_v13 = vpop.eup %145 }
  0xa1   :  { %v93_v14 = vmul.f32 %v146_v13, %v144_v12  ;;  %v148_v15 = vpop.eup %147 }
  0xa2   :  { %v94_v16 = vmul.f32 %v148_v15, %v144_v12 }
  0xa3   :  { %95 = vadd.xlane.f32.xlu0 %v93_v14 }
  0xab   :  { %97 = vadd.xlane.f32.xlu0 %v94_v16 }
 0x116   :  { %v96_v18 = vpop.xlane.xlu0 %95 }
 0x117   :  { %v103_v22 = vperm.slane %v96_v18, %v102_v19 }
 0x11e   :  { %v98_v21 = vpop.xlane.xlu0 %97 }
 0x11f   :  { %v105_v23 = vperm.slane %v98_v21, %v104_v20 }
 0x121   :  { %v107_v24 = vsel %vm106_vm1, %v105_v23, %v103_v22 }
 0x122   :  { %110 = vst.msk [vmem:[#allocation7] sm:$0x1] %vm109_vm2, %v107_v24 }
 0x123   :  { %121 = dma.vmem_to_hbm [thread:$0]  %s117_s25, 16, %s119_s28, [#allocation4]  }
 0x124   :  { %225 = dma.done.wait [#allocation4], 16  }
 0x125   :  { %226 = vsyncadd [#allocation4], 4294967280 }
 0x126   :  { %126 = vsyncpa [#allocation3], 1 }
 0x127   :  { %127 = vsyncpa [#allocation6], 1 }
 0x128   :  { %128 = vsyncpa [#allocation4], 1 }

</bundles_post_ra>
